<compile_context>
chip_gen: v5e
topology: v5e:2x2
jax: 0.10.0
libtpu: 0.0.40
codegen_flags: <defaults>
</compile_context>

<pallas_src>
import functools

import jax
import jax.numpy as jnp
from jax.experimental import pallas as pl
from jax.experimental.pallas import tpu as pltpu

_EPS = 1e-5
_LANE = 128
_SUB = 8


def _round_up(n, m):
    return ((n + m - 1) // m) * m


def _cdiv(a, b):
    return -(-a // b)


def _vmem_capacity_bytes():
    """Physical per-core VMEM; conservative 64 MiB (v7x) fallback if the query is unavailable."""
    try:
        info = pltpu.get_tpu_info()
        cap = int(getattr(info, "vmem_capacity_bytes", 0))
        if cap > 0:
            return cap
    except Exception:
        pass
    return 64 << 20


# --------------------------- Pass 2: BN2 statistics --------------------------- #
def _stats2_kernel(x_ref, w1_ref, s1_ref, t1_ref, w2_ref, sum_ref, ssq_ref,
                   *, batch, tb, tiles_per_core, masked, mdtype):
    c = pl.program_id(0)          # core-parallel axis (size 2)
    j = pl.program_id(1)          # per-core sequential tile axis

    @pl.when(j == 0)
    def _():
        sum_ref[...] = jnp.zeros_like(sum_ref)
        ssq_ref[...] = jnp.zeros_like(ssq_ref)

    h = jnp.dot(x_ref[...], w1_ref[...], preferred_element_type=jnp.float32)
    h = jnp.maximum(h * s1_ref[...] + t1_ref[...], 0.0)            # folded BN1 + ReLU (f32)
    o = jnp.dot(h.astype(mdtype), w2_ref[...], preferred_element_type=jnp.float32)

    if masked:
        # Use the UNCLAMPED global tile id: tail rows past the true batch AND the clamped
        # duplicate tile (odd tile count / core split) both mask to zero.  Select, not multiply,
        # so unspecified out-of-bounds input rows (possibly NaN/Inf) cannot leak into the stats.
        t = c * tiles_per_core + j
        row = t * tb + jax.lax.broadcasted_iota(jnp.int32, (tb, 1), 0)
        o = jnp.where(row < batch, o, 0.0)

    # Batch-axis reduction on the (otherwise idle) MXU; 8 identical sublane rows keep the
    # accumulator store full-tile (no masked sublane stores).
    ones = jnp.ones((_SUB, tb), jnp.float32)
    sum_ref[...] += jnp.dot(ones, o, preferred_element_type=jnp.float32)
    ssq_ref[...] += jnp.dot(ones, o * o, preferred_element_type=jnp.float32)


# ----------------------- Pass 3: normalize + write output --------------------- #
def _forward_kernel(x_ref, w1_ref, s1_ref, t1_ref, w2_ref, s2_ref, t2_ref, o_ref, *, mdtype):
    h = jnp.dot(x_ref[...], w1_ref[...], preferred_element_type=jnp.float32)
    h = jnp.maximum(h * s1_ref[...] + t1_ref[...], 0.0)            # BN1 + ReLU
    o = jnp.dot(h.astype(mdtype), w2_ref[...], preferred_element_type=jnp.float32)
    o = jnp.maximum(o * s2_ref[...] + t2_ref[...], 0.0)            # BN2 + ReLU
    o_ref[...] = o.astype(o_ref.dtype)                              # unpadded [tb, out_dim] store


def imu_encoder(x, params, *, block_b=8192, matmul_dtype=jnp.float32, out_dtype=jnp.float32):
    """Forward pass of IMUEncoder.  x: [B, input_dim] f32.  Returns [B, output_dim] `out_dtype`.

    matmul_dtype=jnp.bfloat16 is recommended at large batch on ALL generations (v5e/v6e/v7x):
    it halves x traffic / VMEM tiles and avoids the multi-pass f32 MXU decomposition on v5e.
    BatchNorm math always stays in f32.  out_dtype=jnp.bfloat16 additionally halves the
    output writeback if downstream tolerates it.
    """
    B, d_in = x.shape
    hidden = params["w1"].shape[1]
    out_dim = params["w2"].shape[1]

    # ---------------- tile sizing from VMEM capacity ----------------
    x_item = jnp.dtype(matmul_dtype).itemsize
    vmem_cap = _vmem_capacity_bytes()
    budget = int(vmem_cap) * 3 // 4                       # ~96 MiB on v5e/v6e, ~48 MiB on v7x
    # Per-row live VMEM: double-buffered x tile (lane-padded to 128) + double-buffered output
    # tile (lane-padded) + ~4 f32 lane-rows of in-kernel intermediates (h, h_cast, o, o*o).
    bytes_per_row = 2 * _LANE * x_item + 2 * _LANE * 4 + 4 * _LANE * 4
    tb_cap = max(_SUB, ((budget - (4 << 20)) // bytes_per_row) // _SUB * _SUB)
    tb = max(_SUB, min(_round_up(block_b, _SUB), _round_up(B, _SUB), tb_cap))
    nt = _cdiv(B, tb)                                     # total batch tiles
    nt2 = _cdiv(nt, 2)                                    # tiles per core (2-way stats split)
    masked = (B % tb != 0) or (2 * nt2 != nt)

    vmem_limit = int(min(budget, max(32 << 20, tb * bytes_per_row + (8 << 20))))
    cp_stats = pltpu.CompilerParams(dimension_semantics=("parallel", "arbitrary"),
                                    vmem_limit_bytes=vmem_limit)
    cp_fwd = pltpu.CompilerParams(dimension_semantics=("parallel",),
                                  vmem_limit_bytes=vmem_limit)

    # ---------------- parameters ----------------
    w1 = params["w1"].astype(jnp.float32)
    w2 = params["w2"].astype(jnp.float32)
    g1 = params["g1"].reshape(1, hidden).astype(jnp.float32)
    be1 = params["be1"].reshape(1, hidden).astype(jnp.float32)
    g2 = params["g2"].reshape(1, out_dim).astype(jnp.float32)
    be2 = params["be2"].reshape(1, out_dim).astype(jnp.float32)
    # NOTE: params["b1"] / params["b2"] are intentionally NOT used: training-mode BatchNorm's
    # mean subtraction cancels a pre-BN Linear bias exactly.

    # Cast matmul inputs ONCE on the HBM side (halves x read traffic for bf16).
    x_m = x.astype(matmul_dtype)
    w1_m = w1.astype(matmul_dtype)
    w2_m = w2.astype(matmul_dtype)

    inv_b = jnp.float32(1.0 / B)

    # ---------------- "pass 1": BN1 statistics via sum(X) + Gram matrix (plain XLA) ----------------
    # h1 = X @ w1 (bias dropped);  mu1 = sum(X) @ w1 / B;  E[h1^2] = diag(w1^T (X^T X) w1) / B.
    w1_s = w1_m.astype(jnp.float32)                       # bf16-rounded weights for stat consistency
    sum_x = jnp.sum(x_m, axis=0, dtype=jnp.float32).reshape(1, d_in)
    gram = jnp.einsum("bi,bj->ij", x_m, x_m, preferred_element_type=jnp.float32)
    mu1 = (sum_x @ w1_s) * inv_b                                             # (1, hidden)
    e_h2 = jnp.sum((gram @ w1_s) * w1_s, axis=0, keepdims=True) * inv_b      # (1, hidden)
    var1 = jnp.maximum(e_h2 - mu1 * mu1, 0.0)             # biased (training-mode) variance
    scale1 = g1 * jax.lax.rsqrt(var1 + _EPS)
    shift1 = be1 - mu1 * scale1

    # ---------------- pass 2: full-batch BN2 statistics (2-way core parallel) ----------------
    def x_map_stats(c, j):
        # Clamp so the block never maps fully out of bounds; the kernel masks duplicates/tail.
        return (jnp.minimum(c * nt2 + j, nt - 1), 0)

    x_spec_stats = pl.BlockSpec((tb, d_in), x_map_stats)
    stat_spec = pl.BlockSpec((_SUB, out_dim), lambda c, j: (c, 0))
    stat_shape = jax.ShapeDtypeStruct((2 * _SUB, out_dim), jnp.float32)

    sum2, ssq2 = pl.pallas_call(
        functools.partial(_stats2_kernel, batch=B, tb=tb, tiles_per_core=nt2,
                          masked=masked, mdtype=matmul_dtype),
        out_shape=(stat_shape, stat_shape),
        grid_spec=pltpu.PrefetchScalarGridSpec(
            num_scalar_prefetch=0, grid=(2, nt2),
            in_specs=[x_spec_stats,
                      pl.BlockSpec((d_in, hidden), lambda c, j: (0, 0)),
                      pl.BlockSpec((1, hidden), lambda c, j: (0, 0)),
                      pl.BlockSpec((1, hidden), lambda c, j: (0, 0)),
                      pl.BlockSpec((hidden, out_dim), lambda c, j: (0, 0))],
            out_specs=(stat_spec, stat_spec)),
        compiler_params=cp_stats,
    )(x_m, w1_m, scale1, shift1, w2_m)

    # Combine the two per-core partial sums (all 8 sublane rows are identical; take row 0).
    sum2 = sum2.reshape(2, _SUB, out_dim)[:, 0, :].sum(axis=0, keepdims=True)
    ssq2 = ssq2.reshape(2, _SUB, out_dim)[:, 0, :].sum(axis=0, keepdims=True)
    mu2 = sum2 * inv_b
    var2 = jnp.maximum(ssq2 * inv_b - mu2 * mu2, 0.0)
    scale2 = g2 * jax.lax.rsqrt(var2 + _EPS)
    shift2 = be2 - mu2 * scale2

    # ---------------- pass 3: normalize + write (parallel over batch tiles) ----------------
    out = pl.pallas_call(
        functools.partial(_forward_kernel, mdtype=matmul_dtype),
        out_shape=jax.ShapeDtypeStruct((B, out_dim), out_dtype),
        grid_spec=pltpu.PrefetchScalarGridSpec(
            num_scalar_prefetch=0, grid=(nt,),
            in_specs=[pl.BlockSpec((tb, d_in), lambda j: (j, 0)),
                      pl.BlockSpec((d_in, hidden), lambda j: (0, 0)),
                      pl.BlockSpec((1, hidden), lambda j: (0, 0)),
                      pl.BlockSpec((1, hidden), lambda j: (0, 0)),
                      pl.BlockSpec((hidden, out_dim), lambda j: (0, 0)),
                      pl.BlockSpec((1, out_dim), lambda j: (0, 0)),
                      pl.BlockSpec((1, out_dim), lambda j: (0, 0))],
            out_specs=pl.BlockSpec((tb, out_dim), lambda j: (j, 0))),
        compiler_params=cp_fwd,
    )(x_m, w1_m, scale1, shift1, w2_m, scale2, shift2)

    return out


def init_params(key, input_dim=10, hidden_dim=128, output_dim=64):
    """Synthetic init matching the PyTorch module's shapes.
    Linear weights/bias ~ U(-1/sqrt(fan_in), 1/sqrt(fan_in)); BN gamma=1, beta=0.
    (Linear biases b1/b2 are kept for the reference but cancelled by training-mode BN.)"""
    k1, k2, k3, k4 = jax.random.split(key, 4)
    lim1 = 1.0 / jnp.sqrt(jnp.float32(input_dim))
    lim2 = 1.0 / jnp.sqrt(jnp.float32(hidden_dim))
    return {
        # stored as [in, out] so the kernel computes x @ W (== PyTorch x @ W.T)
        "w1": jax.random.uniform(k1, (input_dim, hidden_dim), jnp.float32, -lim1, lim1),
        "b1": jax.random.uniform(k2, (1, hidden_dim), jnp.float32, -lim1, lim1),
        "g1": jnp.ones((1, hidden_dim), jnp.float32),
        "be1": jnp.zeros((1, hidden_dim), jnp.float32),
        "w2": jax.random.uniform(k3, (hidden_dim, output_dim), jnp.float32, -lim2, lim2),
        "b2": jax.random.uniform(k4, (1, output_dim), jnp.float32, -lim2, lim2),
        "g2": jnp.ones((1, output_dim), jnp.float32),
        "be2": jnp.zeros((1, output_dim), jnp.float32),
    }


def _reference(x, p):
    """Pure-JAX reference of the PyTorch forward (training-mode BN, with Linear biases)."""
    h = x @ p["w1"] + p["b1"]
    mu1 = h.mean(0, keepdims=True)
    var1 = ((h - mu1) ** 2).mean(0, keepdims=True)
    h = jnp.maximum((h - mu1) / jnp.sqrt(var1 + _EPS) * p["g1"] + p["be1"], 0.0)
    o = h @ p["w2"] + p["b2"]
    mu2 = o.mean(0, keepdims=True)
    var2 = ((o - mu2) ** 2).mean(0, keepdims=True)
    return jnp.maximum((o - mu2) / jnp.sqrt(var2 + _EPS) * p["g2"] + p["be2"], 0.0)


if __name__ == "__main__":
    key = jax.random.PRNGKey(0)
    kx, kp = jax.random.split(key)

    B, INPUT_DIM, HIDDEN, OUTPUT_DIM = 20, 10, 128, 64
    x = jax.random.normal(kx, (B, INPUT_DIM), jnp.float32)
    params = init_params(kp, input_dim=INPUT_DIM, hidden_dim=HIDDEN, output_dim=OUTPUT_DIM)

    # Tiny 8-row batch tile so the demo exercises multi-tile accumulation, the 2-core tile
    # split (including the clamped duplicate tile) and the partial tail block.
    out = jax.block_until_ready(imu_encoder(x, params, block_b=8))
    ref = _reference(x, params)
    assert out.shape == (B, OUTPUT_DIM)
    assert jnp.allclose(out, ref, atol=1e-4, rtol=1e-4), float(jnp.max(jnp.abs(out - ref)))

    # bf16-matmul variant (recommended at large batch on v5e/v6e/v7x); BN math stays f32,
    # so only a loose tolerance is checked here.
    out_bf16 = jax.block_until_ready(imu_encoder(x, params, block_b=8, matmul_dtype=jnp.bfloat16))
    assert jnp.allclose(out_bf16, ref, atol=0.1, rtol=0.1)

    print("KERNEL_OK")
</pallas_src>

<mosaic_0001>
module attributes {stable_mosaic.version = 11 : i64} {
  func.func @_stats2_kernel(%arg0: i32, %arg1: i32, %arg2: memref<8x10xf32, #tpu.memory_space<vmem>>, %arg3: memref<10x128xf32, #tpu.memory_space<vmem>>, %arg4: memref<1x128xf32, #tpu.memory_space<vmem>>, %arg5: memref<1x128xf32, #tpu.memory_space<vmem>>, %arg6: memref<128x64xf32, #tpu.memory_space<vmem>>, %arg7: memref<8x64xf32, #tpu.memory_space<vmem>>, %arg8: memref<8x64xf32, #tpu.memory_space<vmem>>) attributes {dimension_semantics = [#tpu.dimension_semantics<parallel>, #tpu.dimension_semantics<arbitrary>], iteration_bounds = array<i64: 2, 2>, scalar_prefetch = 0 : i64, scratch_operands = 0 : i64, tpu.core_type = #tpu.core_type<tc>, window_params = [{transform_indices = @transform_0, window_bounds = array<i64: 8, 10>}, {pipeline_mode = #tpu.pipeline_mode<synchronous>, transform_indices = @transform_1, window_bounds = array<i64: 10, 128>}, {pipeline_mode = #tpu.pipeline_mode<synchronous>, transform_indices = @transform_2, window_bounds = array<i64: 1, 128>}, {pipeline_mode = #tpu.pipeline_mode<synchronous>, transform_indices = @transform_3, window_bounds = array<i64: 1, 128>}, {pipeline_mode = #tpu.pipeline_mode<synchronous>, transform_indices = @transform_4, window_bounds = array<i64: 128, 64>}, {transform_indices = @transform_5, window_bounds = array<i64: 8, 64>}, {transform_indices = @transform_6, window_bounds = array<i64: 8, 64>}]} {
    %c0_i32 = arith.constant 0 : i32
    %0 = arith.cmpi eq, %arg1, %c0_i32 : i32
    %1 = arith.extui %0 : i1 to i32
    %c0_i32_0 = arith.constant 0 : i32
    %2 = arith.cmpi ne, %1, %c0_i32_0 : i32
    scf.if %2 {
      %cst_24 = arith.constant 0.000000e+00 : f32
      %38 = vector.broadcast %cst_24 : f32 to vector<8x64xf32>
      %c0_25 = arith.constant 0 : index
      %c0_26 = arith.constant 0 : index
      %39 = vector.load %arg7[%c0_25, %c0_26] : memref<8x64xf32, #tpu.memory_space<vmem>>, vector<8x64xf32>
      tpu.vector_store %arg7[%c0_25, %c0_26], %38 {strides = array<i32>} : memref<8x64xf32, #tpu.memory_space<vmem>>, vector<8x64xf32>,
      %cst_27 = arith.constant 0.000000e+00 : f32
      %40 = vector.broadcast %cst_27 : f32 to vector<8x64xf32>
      %c0_28 = arith.constant 0 : index
      %c0_29 = arith.constant 0 : index
      %41 = vector.load %arg8[%c0_28, %c0_29] : memref<8x64xf32, #tpu.memory_space<vmem>>, vector<8x64xf32>
      tpu.vector_store %arg8[%c0_28, %c0_29], %40 {strides = array<i32>} : memref<8x64xf32, #tpu.memory_space<vmem>>, vector<8x64xf32>,
    } else {
    }
    %c0 = arith.constant 0 : index
    %c0_1 = arith.constant 0 : index
    %3 = vector.load %arg2[%c0, %c0_1] : memref<8x10xf32, #tpu.memory_space<vmem>>, vector<8x10xf32>
    %c0_2 = arith.constant 0 : index
    %c0_3 = arith.constant 0 : index
    %4 = vector.load %arg3[%c0_2, %c0_3] : memref<10x128xf32, #tpu.memory_space<vmem>>, vector<10x128xf32>
    %cst = arith.constant dense<0.000000e+00> : vector<8x128xf32>
    %5 = tpu.matmul %3, %4, %cst {dimension_numbers = #tpu.dot_dimension_numbers<[1], [0], [0], [1], [0, 0, 1, 1], [], []>} : vector<8x10xf32>, vector<10x128xf32>, vector<8x128xf32> -> vector<8x128xf32>
    %c0_4 = arith.constant 0 : index
    %c0_5 = arith.constant 0 : index
    %6 = vector.load %arg4[%c0_4, %c0_5] : memref<1x128xf32, #tpu.memory_space<vmem>>, vector<1x128xf32>
    %7 = vector.broadcast %6 : vector<1x128xf32> to vector<8x128xf32>
    %8 = arith.mulf %5, %7 : vector<8x128xf32>
    %c0_6 = arith.constant 0 : index
    %c0_7 = arith.constant 0 : index
    %9 = vector.load %arg5[%c0_6, %c0_7] : memref<1x128xf32, #tpu.memory_space<vmem>>, vector<1x128xf32>
    %10 = vector.broadcast %9 : vector<1x128xf32> to vector<8x128xf32>
    %11 = arith.addf %8, %10 : vector<8x128xf32>
    %cst_8 = arith.constant 0.000000e+00 : f32
    %12 = vector.broadcast %cst_8 : f32 to vector<8x128xf32>
    %13 = arith.maximumf %11, %12 : vector<8x128xf32>
    %c0_9 = arith.constant 0 : index
    %c0_10 = arith.constant 0 : index
    %14 = vector.load %arg6[%c0_9, %c0_10] : memref<128x64xf32, #tpu.memory_space<vmem>>, vector<128x64xf32>
    %cst_11 = arith.constant dense<0.000000e+00> : vector<8x64xf32>
    %15 = tpu.matmul %13, %14, %cst_11 {dimension_numbers = #tpu.dot_dimension_numbers<[1], [0], [0], [1], [0, 0, 1, 1], [], []>} : vector<8x128xf32>, vector<128x64xf32>, vector<8x64xf32> -> vector<8x64xf32>
    %c2_i32 = arith.constant 2 : i32
    %16 = arith.muli %arg0, %c2_i32 : i32
    %17 = arith.addi %16, %arg1 : i32
    %c8_i32 = arith.constant 8 : i32
    %18 = arith.muli %17, %c8_i32 : i32
    %19 = tpu.iota {dimensions = array<i32: 0>} : vector<8x1xi32>
    %20 = vector.broadcast %18 : i32 to vector<8x1xi32>
    %21 = arith.addi %20, %19 : vector<8x1xi32>
    %c20_i32 = arith.constant 20 : i32
    %22 = vector.broadcast %c20_i32 : i32 to vector<8x1xi32>
    %23 = arith.cmpi slt, %21, %22 : vector<8x1xi32>
    %cst_12 = arith.constant 0.000000e+00 : f32
    %24 = vector.shape_cast %23 : vector<8x1xi1> to vector<8x1xi1>
    %25 = vector.broadcast %24 : vector<8x1xi1> to vector<8x64xi1>
    %26 = vector.broadcast %cst_12 : f32 to vector<8x64xf32>
    %27 = arith.select %25, %15, %26 : vector<8x64xi1>, vector<8x64xf32>
    %cst_13 = arith.constant 1.000000e+00 : f32
    %28 = vector.broadcast %cst_13 : f32 to vector<8x8xf32>
    %c0_14 = arith.constant 0 : index
    %c0_15 = arith.constant 0 : index
    %29 = vector.load %arg7[%c0_14, %c0_15] : memref<8x64xf32, #tpu.memory_space<vmem>>, vector<8x64xf32>
    %cst_16 = arith.constant dense<0.000000e+00> : vector<8x64xf32>
    %30 = tpu.matmul %28, %27, %cst_16 {dimension_numbers = #tpu.dot_dimension_numbers<[1], [0], [0], [1], [0, 0, 1, 1], [], []>} : vector<8x8xf32>, vector<8x64xf32>, vector<8x64xf32> -> vector<8x64xf32>
    %31 = arith.addf %29, %30 : vector<8x64xf32>
    %c0_17 = arith.constant 0 : index
    %c0_18 = arith.constant 0 : index
    %32 = vector.load %arg7[%c0_17, %c0_18] : memref<8x64xf32, #tpu.memory_space<vmem>>, vector<8x64xf32>
    tpu.vector_store %arg7[%c0_17, %c0_18], %31 {strides = array<i32>} : memref<8x64xf32, #tpu.memory_space<vmem>>, vector<8x64xf32>,
    %c0_19 = arith.constant 0 : index
    %c0_20 = arith.constant 0 : index
    %33 = vector.load %arg8[%c0_19, %c0_20] : memref<8x64xf32, #tpu.memory_space<vmem>>, vector<8x64xf32>
    %34 = arith.mulf %27, %27 : vector<8x64xf32>
    %cst_21 = arith.constant dense<0.000000e+00> : vector<8x64xf32>
    %35 = tpu.matmul %28, %34, %cst_21 {dimension_numbers = #tpu.dot_dimension_numbers<[1], [0], [0], [1], [0, 0, 1, 1], [], []>} : vector<8x8xf32>, vector<8x64xf32>, vector<8x64xf32> -> vector<8x64xf32>
    %36 = arith.addf %33, %35 : vector<8x64xf32>
    %c0_22 = arith.constant 0 : index
    %c0_23 = arith.constant 0 : index
    %37 = vector.load %arg8[%c0_22, %c0_23] : memref<8x64xf32, #tpu.memory_space<vmem>>, vector<8x64xf32>
    tpu.vector_store %arg8[%c0_22, %c0_23], %36 {strides = array<i32>} : memref<8x64xf32, #tpu.memory_space<vmem>>, vector<8x64xf32>,
    return
  }
  func.func @transform_0(%arg0: i32, %arg1: i32) -> (i32, i32) {
    %c2_i32 = arith.constant 2 : i32
    %0 = arith.muli %arg0, %c2_i32 : i32
    %1 = arith.addi %0, %arg1 : i32
    %c2_i32_0 = arith.constant 2 : i32
    %2 = arith.minsi %1, %c2_i32_0 : i32
    %c0_i32 = arith.constant 0 : i32
    %c0_i32_1 = arith.constant 0 : i32
    return %2, %c0_i32 : i32, i32
  }
  func.func @transform_1(%arg0: i32, %arg1: i32) -> (i32, i32) {
    %c0_i32 = arith.constant 0 : i32
    %c0_i32_0 = arith.constant 0 : i32
    %c0_i32_1 = arith.constant 0 : i32
    return %c0_i32, %c0_i32_0 : i32, i32
  }
  func.func @transform_2(%arg0: i32, %arg1: i32) -> (i32, i32) {
    %c0_i32 = arith.constant 0 : i32
    %c0_i32_0 = arith.constant 0 : i32
    %c0_i32_1 = arith.constant 0 : i32
    return %c0_i32, %c0_i32_0 : i32, i32
  }
  func.func @transform_3(%arg0: i32, %arg1: i32) -> (i32, i32) {
    %c0_i32 = arith.constant 0 : i32
    %c0_i32_0 = arith.constant 0 : i32
    %c0_i32_1 = arith.constant 0 : i32
    return %c0_i32, %c0_i32_0 : i32, i32
  }
  func.func @transform_4(%arg0: i32, %arg1: i32) -> (i32, i32) {
    %c0_i32 = arith.constant 0 : i32
    %c0_i32_0 = arith.constant 0 : i32
    %c0_i32_1 = arith.constant 0 : i32
    return %c0_i32, %c0_i32_0 : i32, i32
  }
  func.func @transform_5(%arg0: i32, %arg1: i32) -> (i32, i32) {
    %c0_i32 = arith.constant 0 : i32
    %c0_i32_0 = arith.constant 0 : i32
    return %arg0, %c0_i32 : i32, i32
  }
  func.func @transform_6(%arg0: i32, %arg1: i32) -> (i32, i32) {
    %c0_i32 = arith.constant 0 : i32
    %c0_i32_0 = arith.constant 0 : i32
    return %arg0, %c0_i32 : i32, i32
  }
}

</mosaic_0001>

<bundles_post_ra>
// kernel: tpu_custom_call.1
= control target key start
LH: loop header
LB: loop body
LE: loop exit
PB: predicated region body
PF: predicated region fallthrough
CT: control target
= control target key end

     0   :  { %s1079_s0 = inlined_call_operand.vmem [shape: f32[20,10], index: 0, kind: input, shape index: {}]   ;;  %s1080_s1 = inlined_call_operand.vmem [shape: f32[10,128], index: 1, kind: input, shape index: {}]   ;;  %s1081_s2 = inlined_call_operand.vmem [shape: f32[1,128], index: 2, kind: input, shape index: {}]   ;;  %s1082_s3 = inlined_call_operand.vmem [shape: f32[1,128], index: 3, kind: input, shape index: {}]   ;;  %s1083_s4 = inlined_call_operand.vmem [shape: f32[128,64], index: 4, kind: input, shape index: {}]   ;;  %s1084_s5 = inlined_call_operand.hbm [shape: f32[16,64], index: 5, kind: output, shape index: {0}]   ;;  %s1085_s6 = inlined_call_operand.hbm [shape: f32[16,64], index: 6, kind: output, shape index: {1}]  }
   0x1   :  { %1086 = sst [smem:[#allocation8_spill]] %s1079_s0 }
   0x2   :  { %1087 = sst [smem:[#allocation9_spill]] %s1080_s1 }
   0x3   :  { %12 = vsyncpa [#allocation3], 0 }
   0x4   :  { %14 = vsyncpa [#allocation3 + $0x1], 0 }
   0x5   :  { %15 = vsyncpa [#allocation5], 0 }
   0x6   :  { %17 = vsyncpa [#allocation5 + $0x1], 0  ;;  %s857_s21 = smov 0   ;;  %s859_s22 = smov 0  }
   0x7   :  { %s861_s23 = smov 0   ;;  %s863_s24 = smov 0  }
   0x8   :  { %s865_s25 = smov 0   ;;  %s867_s26 = smov 0  }
   0x9   :  { %s869_s27 = smov 0   ;;  %s871_s28 = smov 0  }
   0xa LB: > { %s584_s29 = sadd.s32 4294967295, %s818_s28   ;;  %s585_s30 = sadd.s32 4294967294, %s818_s28   ;;  %s818_s28 = sphi %s871_s28, %s23_s28   ;;  %s814_s27 = sphi %s869_s27, %s1098_s27   ;;  %s810_s26 = sphi %s867_s26, %s1097_s26   ;;  %s806_s25 = sphi %s865_s25, %s1096_s25   ;;  %s802_s24 = sphi %s863_s24, %s1095_s24   ;;  %s798_s23 = sphi %s861_s23, %s1094_s23   ;;  %s794_s22 = sphi %s859_s22, %s1093_s22   ;;  %s790_s21 = sphi %s857_s21, %s1092_s21  }
   0xb   : > { %s32_s7 = sadd.s32 1, %s810_s26  ;;  %s35_s8 = sadd.s32 1, %s814_s27 }
   0xc   : > { %p33_p0 = scmp.ge.s32.totalorder %s32_s7, 2  ;;  %p170_p1 = scmp.ne.s32.totalorder %s798_s23, %s794_s22 }
   0xd   : > { %p171_p2 = scmp.eq.s32.totalorder %s584_s29, 3  ;;  %p176_p4 = scmp.ne.s32.totalorder %s794_s22, %s790_s21 }
   0xe   : > { %s1100_s7 = smov (%p33_p0, %s32_s7), 0  ;;  %s1102_s8 = smov (!%p33_p0, %s35_s8), %s814_s27 }
   0xf   : > { %p906_p3 = por %p171_p2, %p170_p1  ;;  %p37_p5 = scmp.ge.s32.totalorder %s1102_s8, 2 }
  0x10   : > { %p177_p6 = scmp.eq.s32.totalorder %s585_s30, 3  ;;  %p590_p7 = scmp.ge.s32.totalorder %s818_s28, 1 }
  0x11   : > { %p248_p8 = scmp.lt.s32.totalorder %s818_s28, 5  ;;  %s1104_s8 = smov (%p37_p5, %s1102_s8), 0 }
  0x12   : > { %p916_p9 = por %p177_p6, %p176_p4  ;;  %s157_s11 = ssub.s32 %s814_s27, %s1104_s8 }
  0x13   : > { %p249_p10 = pnand %p590_p7, %p248_p8  ;;  %s160_s12 = sadd.s32 1, %s798_s23 }
  0x14   : > { %p158_p11 = scmp.eq.s32.totalorder %s157_s11, 0  ;;  %s927_s14 = sand.u32 (!%p249_p10), 1, %s794_s22  }
  0x15   : > { %252 = sbr.rel (%p249_p10) target bundleno = 456 (0x1c8), region = 40  ;;  %s593_s15 = sshll.u32 (!%p249_p10), %s806_s25, 1 }
  0x16   : > { %s924_s13 = scalar_select %p158_p11, %s798_s23, %s160_s12  }
  0x17   : > { %s591_s16 = sshll.u32 (!%p249_p10), %s927_s14, 3  ;;  %s932_s17 = sadd.s32 (!%p249_p10), %s802_s24, %s593_s15 }
  0x18   : > { %p288_p12 = scmp.lt.s32.totalorder (!%p249_p10), %s932_s17, 2  ;;  %s1090_s0 = sld [smem:[#allocation8_spill]] (!%p249_p10) }
  0x19   : > { %s939_s11 = scalar_lea.vmem (!%p249_p10), [#allocation2], %s591_s16  ;;  %s941_s12 = scalar_lea.vmem (!%p249_p10), [#allocation4], %s591_s16 }
  0x1a   : > { %s289_s18 = scalar_select %p288_p12, %s932_s17, 2 }
  0x1b   : > { %p598_p13 = scmp.ne.s32.totalorder %s802_s24, 0 }
  0x1c   : > { %s1106_s18 = smov (!%p288_p12, %s289_s18), 2 }
  0x1d   : > { %s597_s19 = sshll.u32 %s1106_s18, 3  ;;  %301 = sbr.rel (%p598_p13) target bundleno = 37 (0x25), region = 44 }
  0x1e   : > { %s293_s30 = scalar_lea.vmem %s1090_s0, %s597_s19 }
  0x22   : > { %vm302_vm0 = vcmask 523264   ;;  %v820_v0 = vmov 0.0  }
  0x23   : > { %303 = vst.msk [vmem:[%s939_s11] sm:$0xff] %vm302_vm0, %v820_v0 }
  0x24   : > { %304 = vst.msk [vmem:[%s941_s12] sm:$0xff] %vm302_vm0, %v820_v0 }
  0x25 PF: > { %s1091_s1 = sld [smem:[#allocation9_spill]]  ;;  %vm312_vm1 = vcmask 1041408   ;;  %v305_v3 = vld [vmem:[%s293_s30] sm:$0xff]  ;;  %vm308_vm2 = vcmask 80896   ;;  %v362_v4 = vld [vmem:[%s1083_s4 + $0x78] sm:$0xff]  ;;  %v361_v5 = vld [vmem:[%s1083_s4 + $0x70] sm:$0xff]  ;;  %v386_v26 = vlaneseq }
  0x26   : > { %363 = vmatpush.msra.mxu1 %v362_v4  ;;  %v360_v6 = vld [vmem:[%s1083_s4 + $0x68] sm:$0xff]  ;;  %v359_v7 = vld [vmem:[%s1083_s4 + $0x60] sm:$0xff]  ;;  %v358_v8 = vld [vmem:[%s1083_s4 + $0x58] sm:$0xff]  ;;  %s602_s19 = sshll.u32 %s932_s17, 3  ;;  %vm395_vm4 = vcmask 64512   ;;  %v821_v33 = vmov 1.0  }
  0x27   : > { %v357_v9 = vld [vmem:[%s1083_s4 + $0x50] sm:$0xff]  ;;  %v356_v10 = vld [vmem:[%s1083_s4 + $0x48] sm:$0xff]  ;;  %v355_v11 = vld [vmem:[%s1083_s4 + $0x40] sm:$0xff]  ;;  %v387_v27 = vshrl.u32 %v386_v26, 7  ;;  %v388_v28 = vstv %s602_s19  ;;  %s608_s20 = sshll.u32 %s806_s25, 3  ;;  %s464_s15 = sshll.u32 %s939_s11, 4  ;;  %s465_s15 = int_to_ptr.vmem [resolvable:$true] %s464_s15 }
  0x28   : > { %364 = vmatpush.msra.mxu1 %v361_v5  ;;  %v354_v12 = vld [vmem:[%s1083_s4 + $0x38] sm:$0xff]  ;;  %v353_v13 = vld [vmem:[%s1083_s4 + $0x30] sm:$0xff]  ;;  %v352_v14 = vld [vmem:[%s1083_s4 + $0x28] sm:$0xff]  ;;  %s462_s24 = scalar_lea.hbm %s1084_s5, %s608_s20  ;;  %s476_s29 = scalar_lea.hbm %s1085_s6, %s608_s20  ;;  %vm420_vm5 = vcmask 523264  }
  0x29   : > { %v351_v15 = vld [vmem:[%s1083_s4 + $0x20] sm:$0xff]  ;;  %v350_v16 = vld [vmem:[%s1083_s4 + $0x18] sm:$0xff]  ;;  %v349_v17 = vld [vmem:[%s1083_s4 + $0x10] sm:$0xff]  ;;  %v389_v29 = vadd.s32 %v388_v28, %v387_v27  ;;  %s478_s18 = sshll.u32 %s941_s12, 4  ;;  %s480_s19 = sshll.u32 %s476_s29, 4  ;;  %s1020_s18 = int_to_ptr.vmem [resolvable:$true] %s478_s18  ;;  %s1022_s19 = int_to_ptr.hbm [resolvable:$true] %s480_s19 }
  0x2a   : > { %365 = vmatpush.msra.mxu1 %v360_v6  ;;  %v348_v18 = vld [vmem:[%s1083_s4 + $0x8] sm:$0xff]  ;;  %v347_v19 = vld [vmem:[%s1083_s4] sm:$0xff]  ;;  %s447_s25 = scalar_lea.sflag [#allocation3], %s927_s14  ;;  %s712_s0 = scalar_lea.hbm %s1084_s5, 16 }
  0x2b   : > { %v307_v1 = vld [vmem:[%s1091_s1 + $0x8] sm:$0x3]  ;;  %v306_v2 = vld [vmem:[%s1091_s1] sm:$0xff]  ;;  %vm390_vm3 = vcmp.lt.s32.totalorder %v389_v29, 20  ;;  %s466_s1 = sshll.u32 %s462_s24, 4  ;;  %v422_v37 = vld [vmem:[%s941_s12] sm:$0xff]  ;;  %s467_s1 = int_to_ptr.hbm [resolvable:$true] %s466_s1 }
  0x2c   : > { %599 = vmatpush.msk.msra.mxu0 %vm312_vm1, %v307_v1  ;;  %366 = vmatpush.msra.mxu1 %v359_v7  ;;  %v690_v20 = vld [vmem:[%s1081_s2] ss:$0 sm:$0xff]  ;;  %s706_s20 = sshra.s32 %s467_s1, 4  ;;  %s707_s20 = int_to_ptr.hbm [resolvable:$true] %s706_s20 }
  0x2d   : > { %v691_v21 = vld [vmem:[%s1082_s3] ss:$0 sm:$0xff]  ;;  %s708_s17 = scalar_lea.hbm %s707_s20, 8  ;;  %p713_p4 = scmp.lt.s32.totalorder %s707_s20, %s1084_s5 }
  0x2e   : > { %331 = vmatpush.msra.mxu0 %v306_v2  ;;  %367 = vmatpush.msra.mxu1 %v358_v8  ;;  %v394_v34 = vld [vmem:[%s939_s11] sm:$0xff]  ;;  %p709_p0 = scmp.ne.s32.totalorder %s707_s20, %s708_s17  ;;  %p714_p5 = scmp.lt.s32.totalorder %s712_s0, %s708_s17 }
  0x2f   : > { %600 = vmatmul.msk.f32.vlgmr.msra.gmra.mxu0 %vm308_vm2, %v305_v3 }
  0x30   : > { %368 = vmatpush.msra.mxu1 %v357_v9  ;;  %p710_p1 = pnand %p709_p0, %p906_p3  ;;  %p715_p6 = por %p714_p5, %p713_p4 }
  0x32   : > { %369 = vmatpush.msra.mxu1 %v356_v10  ;;  %p711_p2 = pneg %p710_p1 }
  0x34   : > { %370 = vmatpush.msra.mxu1 %v355_v11  ;;  %p716_p7 = pnand %p715_p6, %p711_p2 }
  0x36   : > { %371 = vmatpush.msra.mxu1 %v354_v12 }
  0x38   : > { %372 = vmatpush.msra.mxu1 %v353_v13 }
  0x3a   : > { %373 = vmatpush.msra.mxu1 %v352_v14 }
  0x3c   : > { %374 = vmatpush.msra.mxu1 %v351_v15 }
  0x3e   : > { %375 = vmatpush.msra.mxu1 %v350_v16 }
  0x40   : > { %376 = vmatpush.msra.mxu1 %v349_v17 }
  0x42   : > { %377 = vmatpush.msra.mxu1 %v348_v18 }
  0x44   : > { %378 = vmatpush.msra.mxu1 %v347_v19 }
  0xac   : > { %v333_v22 = vpop.f32.mrf.mxu0 }
  0xad   : > { %v340_v23 = vmul.f32 %v690_v20, %v333_v22 }
  0xaf   : > { %v345_v24 = vadd.f32 %v691_v21, %v340_v23 }
  0xb1   : > { %v346_v25 = vmax.f32 %v345_v24, 0.0 }
  0xb3   : > { %379 = vmatmul.f32.vlgmr.msra.gmra.mxu1 %v346_v25 }
 0x130   : > { %v380_v30 = vpop.f32.mrf.mxu1 }
 0x131   : > { %603 = vmatpush.msk.msra.mxu2 %vm390_vm3, %v380_v30  ;;  %v393_v31 = vsel %vm390_vm3, %v380_v30, 0.0 }
 0x132   : > { %v423_v32 = vmul.f32 %v393_v31, %v393_v31  ;;  %604 = vmatmul.msk.f32.vlgmr.msra.gmra.mxu2 %vm395_vm4, %v821_v33 }
 0x134   : > { %439 = vmatpush.msra.mxu3 %v423_v32 }
 0x135   : > { %605 = vmatmul.msk.f32.vlgmr.msra.gmra.mxu3 %vm395_vm4, %v821_v33 }
 0x1b5   : > { %v416_v35 = vpop.f32.mrf.mxu2 }
 0x1b6   : > { %v419_v36 = vadd.f32 %v416_v35, %v394_v34 }
 0x1b8   : > { %v441_v38 = vpop.f32.mrf.mxu3  ;;  %421 = vst.msk [vmem:[%s939_s11] sm:$0xff] %vm420_vm5, %v419_v36 }
 0x1b9   : > { %v444_v39 = vadd.f32 %v441_v38, %v422_v37 }
 0x1ba   : > { %719 = shalt.err (!%p716_p7)
}
 0x1bb   : > { %612 = dma.vmem_to_hbm [thread:$0]  (%p906_p3), %s465_s15, 128, %s467_s1, %s447_s25   ;;  %445 = vst.msk [vmem:[%s941_s12] sm:$0xff] %vm420_vm5, %v444_v39 }
 0x1bc   : > { %s452_s11 = scalar_lea.sflag [#allocation5], %s927_s14  ;;  %s734_s30 = sshra.s32 %s1022_s19, 4  ;;  %s735_s30 = int_to_ptr.hbm [resolvable:$true] %s734_s30 }
 0x1bd   : > { %s736_s24 = scalar_lea.hbm %s735_s30, 8  ;;  %s740_s0 = scalar_lea.hbm %s1085_s6, 16 }
 0x1be   : > { %p737_p8 = scmp.ne.s32.totalorder %s735_s30, %s736_s24  ;;  %p741_p12 = scmp.lt.s32.totalorder %s735_s30, %s1085_s6 }
 0x1bf   : > { %p742_p13 = scmp.lt.s32.totalorder %s740_s0, %s736_s24 }
 0x1c0   : > { %p738_p10 = pnand %p737_p8, %p906_p3 }
 0x1c1   : > { %p743_p0 = por %p742_p13, %p741_p12 }
 0x1c2   : > { %p739_p11 = pneg %p738_p10 }
 0x1c4   : > { %p744_p1 = pnand %p743_p0, %p739_p11 }
 0x1c6   : > { %747 = shalt.err (!%p744_p1)
}
 0x1c7   : > { %613 = dma.vmem_to_hbm [thread:$0]  (%p906_p3), %s1020_s18, 128, %s1022_s19, %s452_s11  }
 0x1c8 PF: > { %p623_p2 = scmp.ge.s32.totalorder %s818_s28, 2  ;;  %s492_s14 = sand.u32 1, %s790_s21  }
 0x1c9   : > { %s493_s12 = scalar_lea.sflag [#allocation3], %s492_s14 }
 0x1ca   : > { %p617_p4 = pnand %p623_p2, %p916_p9 }
 0x1cc   : > { %p618_p5 = pneg %p617_p4 }
 0x1ce   : > { %781 = dma.done.wait (%p618_p5), %s493_s12, 128  }
 0x1cf   : > { %783 = vsyncadd (%p618_p5), %s493_s12, 4294967168  ;;  %s503_s15 = scalar_lea.sflag [#allocation5], %s492_s14 }
 0x1d0   : > { %785 = dma.done.wait (%p618_p5), %s503_s15, 128  }
 0x1d1   : > { %787 = vsyncadd (%p618_p5), %s503_s15, 4294967168  ;;  %s23_s28 = sadd.s32 1, %s818_s28   ;;  %s1092_s21 = smov %s794_s22 }
 0x1d2   : > { %p20_p6 = scmp.ge.s32.totalorder %s23_s28, 6   ;;  %s1093_s22 = smov %s798_s23 }
 0x1d3   : > { %s1094_s23 = smov %s924_s13  ;;  %s1095_s24 = smov %s810_s26 }
 0x1d4   : > { %s1096_s25 = smov %s814_s27  ;;  %s1097_s26 = smov %s1100_s7 }
 0x1d5   : > { %s1098_s27 = smov %s1104_s8  ;;  %22 = sbr.rel (!%p20_p6) target bundleno = 10 (0xa), region = 96 }
 0x1da   :  { %509 = vsyncpa [#allocation3], 1 }
 0x1db   :  { %511 = vsyncpa [#allocation3 + $0x1], 1 }
 0x1dc   :  { %512 = vsyncpa [#allocation5], 1 }
 0x1dd   :  { %514 = vsyncpa [#allocation5 + $0x1], 1 }

</bundles_post_ra>
